<compile_context>
chip_gen: v6e
topology: v6e:2x2x1
jax: 0.10.0
libtpu: 0.0.40
codegen_flags: <defaults>
</compile_context>

<pallas_src>
import functools

import jax
import jax.numpy as jnp
from jax.experimental import pallas as pl
from jax.experimental.pallas import tpu as pltpu


# --------------------------------------------------------------------------
# small helpers
# --------------------------------------------------------------------------
def _round_up(x, m):
    return (x + m - 1) // m * m


def _cdiv(a, b):
    return -(-a // b)


def _sublane_align(dtype):
    """Minimum second-to-last block dim for a dtype."""
    itemsize = jnp.dtype(dtype).itemsize
    if itemsize >= 4:
        return 8
    if itemsize == 2:
        return 16
    return 32


def _split_dim(dim, align, max_tile):
    """Pad `dim` to `align`, then pick a tile (multiple of `align`, <= max_tile)
    that divides the padded dim with minimal overshoot."""
    dim_p = _round_up(max(dim, align), align)
    n = _cdiv(dim_p, max_tile)
    tile = _round_up(_cdiv(dim_p, n), align)
    dim_p = _round_up(dim_p, tile)      # exact multiple of tile
    return dim_p, tile


# --------------------------------------------------------------------------
# kernels
# --------------------------------------------------------------------------
def _lws_kernel_single_k(x_ref, wT_ref, s_ref, o_ref):
    """F fits in one K tile: no accumulator, fused per-class scale epilogue."""
    y = jnp.dot(x_ref[...], wT_ref[...], preferred_element_type=jnp.float32)
    # scales block is (1, tn) -> broadcasts over the (tm, tn) result.
    o_ref[...] = (y * s_ref[...]).astype(o_ref.dtype)


def _lws_kernel_multi_k(x_ref, wT_ref, s_ref, o_ref, acc_ref):
    """Tiled matmul over K with f32 accumulator, scale fused at the last K step."""
    k = pl.program_id(2)

    @pl.when(k == 0)
    def _():
        acc_ref[...] = jnp.zeros_like(acc_ref)

    acc_ref[...] += jnp.dot(
        x_ref[...], wT_ref[...], preferred_element_type=jnp.float32
    )

    @pl.when(k == pl.num_programs(2) - 1)
    def _():
        o_ref[...] = (acc_ref[...] * s_ref[...]).astype(o_ref.dtype)


# --------------------------------------------------------------------------
# one-time weight preparation (model-load time; NOT in the forward hot path)
# --------------------------------------------------------------------------
def prepare_classifier_lws(
    W,
    scales,
    *,
    weight_dtype=jnp.bfloat16,
    max_tn=512,
    max_tk=2048,
    split_n_for_megacore=True,
):
    """W: (num_classes, feat_dim) frozen weight, scales: (num_classes,).

    Returns (wT_padded, scales_2d_padded, plan_dict). Padding + dtype cast of
    the frozen weight happen exactly once here, so the per-call path never
    touches the F*C weight bytes outside the kernel's own DMA.
    """
    C, F = W.shape
    assert scales.shape == (C,)

    Cp, tn = _split_dim(C, 128, max_tn)
    if split_n_for_megacore and Cp // tn == 1 and Cp >= 256:
        # Re-split N so >=2 parallel tiles exist (keeps both v7x TCs busy).
        half = Cp // 2
        for cand in range(half // 128, 0, -1):
            t = cand * 128
            if Cp % t == 0:
                tn = t
                break
    Fp, tk = _split_dim(F, 128, max_tk)

    wT = W.T.astype(weight_dtype)                       # (F, C), frozen
    if (Fp, Cp) != (F, C):
        wT = jnp.pad(wT, ((0, Fp - F), (0, Cp - C)))    # one-time pad
    s = scales.astype(jnp.float32)
    if Cp != C:
        s = jnp.pad(s, (0, Cp - C))
    s2d = s.reshape(1, Cp)

    plan = {"C": C, "F": F, "tn": tn, "tk": tk}
    return wT, s2d, plan


# --------------------------------------------------------------------------
# forward
# --------------------------------------------------------------------------
@functools.partial(
    jax.jit, static_argnames=("C", "F", "tn", "tk", "out_dtype", "max_tm")
)
def classifier_lws_apply(x, wT_p, scales_p2d, *, C, F, tn, tk,
                         out_dtype=None, max_tm=512):
    """y = (x @ W^T) * scales  with x:(B,F) -> y:(B,C), using prepared weights."""
    B, Fx = x.shape
    Fp, Cp = wT_p.shape
    assert Fx == F, "x feature dim must match prepared weight feature dim"
    assert Fp % tk == 0 and Cp % tn == 0
    out_dtype = out_dtype or x.dtype

    # dtype-aware sublane rounding for the batch (M) axis.
    align_m = max(_sublane_align(x.dtype), _sublane_align(out_dtype))
    Bp, tm = _split_dim(B, align_m, max_tm)

    # Only x is padded per call (cheap: B << C,F typically); the weight was
    # padded once in prepare_classifier_lws.
    if (Bp, Fp) != (B, Fx):
        x = jnp.pad(x, ((0, Bp - B), (0, Fp - Fx)))

    n_m, n_n, n_k = Bp // tm, Cp // tn, Fp // tk

    cost = pl.CostEstimate(
        flops=2 * B * F * C,
        transcendentals=0,
        bytes_accessed=(
            Bp * Fp * x.dtype.itemsize * (n_n if n_k > 1 else 1)   # x re-reads
            + Fp * Cp * wT_p.dtype.itemsize * n_m                  # weight re-streams
            + Cp * 4
            + Bp * Cp * jnp.dtype(out_dtype).itemsize
        ),
    )
    # 48 MiB fits every generation (v7x physical VMEM is 64 MiB) and leaves
    # room for tm=512 / tk=2048 f32 tiles double-buffered on v5e/v6e.
    cparams_kw = dict(vmem_limit_bytes=48 * 1024 * 1024)

    if n_k == 1:
        # Fast path: single K step — no accumulator scratch, 2-D grid.
        # (If xprof shows exposed weight DMA here, pipeline_mode=pl.Buffered(3)
        #  on the wT spec is the next cheap knob.)
        out = pl.pallas_call(
            _lws_kernel_single_k,
            out_shape=jax.ShapeDtypeStruct((Bp, Cp), out_dtype),
            grid_spec=pltpu.PrefetchScalarGridSpec(
                num_scalar_prefetch=0,
                grid=(n_m, n_n),
                in_specs=[
                    pl.BlockSpec((tm, Fp), lambda i, j: (i, 0)),   # x tile
                    pl.BlockSpec((Fp, tn), lambda i, j: (0, j)),   # wT tile
                    pl.BlockSpec((1, tn), lambda i, j: (0, j)),    # scales tile
                ],
                out_specs=pl.BlockSpec((tm, tn), lambda i, j: (i, j)),
            ),
            compiler_params=pltpu.CompilerParams(
                dimension_semantics=("parallel", "parallel"), **cparams_kw
            ),
            cost_estimate=cost,
        )(x, wT_p, scales_p2d)
    else:
        # General path: reduce over K (last grid axis), f32 accumulator.
        out = pl.pallas_call(
            _lws_kernel_multi_k,
            out_shape=jax.ShapeDtypeStruct((Bp, Cp), out_dtype),
            grid_spec=pltpu.PrefetchScalarGridSpec(
                num_scalar_prefetch=0,
                grid=(n_m, n_n, n_k),
                in_specs=[
                    pl.BlockSpec((tm, tk), lambda i, j, k: (i, k)),  # x tile
                    pl.BlockSpec((tk, tn), lambda i, j, k: (k, j)),  # wT tile
                    # index ignores k -> not re-fetched across the K loop
                    pl.BlockSpec((1, tn), lambda i, j, k: (0, j)),   # scales
                ],
                out_specs=pl.BlockSpec((tm, tn), lambda i, j, k: (i, j)),
                scratch_shapes=[pltpu.VMEM((tm, tn), jnp.float32)],
            ),
            compiler_params=pltpu.CompilerParams(
                dimension_semantics=("parallel", "parallel", "arbitrary"),
                **cparams_kw,
            ),
            cost_estimate=cost,
        )(x, wT_p, scales_p2d)

    if (Bp, Cp) != (B, C):
        out = out[:B, :C]
    return out


def classifier_lws_forward(x, prepared, *, out_dtype=None):
    """Convenience wrapper: prepared = output of prepare_classifier_lws."""
    wT_p, s2d, plan = prepared
    return classifier_lws_apply(
        x, wT_p, s2d,
        C=plan["C"], F=plan["F"], tn=plan["tn"], tk=plan["tk"],
        out_dtype=out_dtype,
    )


# --------------------------------------------------------------------------
# demo / correctness check
# --------------------------------------------------------------------------
if __name__ == "__main__":
    # ---- Test 1: small exact f32 path (batch=8, feat_dim=128, classes=256) ----
    B, FEAT, NUM_CLASSES = 8, 128, 256

    key = jax.random.PRNGKey(0)
    kx, kw, ks = jax.random.split(key, 3)

    x = jax.random.normal(kx, (B, FEAT), dtype=jnp.float32)

    # nn.Linear default init (uniform +-1/sqrt(fan_in)); scales = ones + eps.
    bound = 1.0 / (FEAT ** 0.5)
    W = jax.random.uniform(kw, (NUM_CLASSES, FEAT), jnp.float32, -bound, bound)
    scales = jnp.ones((NUM_CLASSES,), jnp.float32) + 0.01 * jax.random.normal(
        ks, (NUM_CLASSES,), jnp.float32
    )

    prepared_f32 = prepare_classifier_lws(W, scales, weight_dtype=jnp.float32)
    y = jax.block_until_ready(classifier_lws_forward(x, prepared_f32))

    y_ref = (x @ W.T) * scales[None, :]
    assert y.shape == (B, NUM_CLASSES)
    assert jnp.allclose(y, y_ref, atol=1e-4, rtol=1e-4)

    # ---- Test 2: ragged shapes, multi-K path, bf16 weight/activation stream ----
    B2, F2, C2 = 10, 3000, 300
    k1, k2, k3 = jax.random.split(jax.random.PRNGKey(1), 3)
    x2 = jax.random.normal(k1, (B2, F2), jnp.float32)
    W2 = jax.random.normal(k2, (C2, F2), jnp.float32) * 0.02
    s2 = 1.0 + 0.01 * jax.random.normal(k3, (C2,), jnp.float32)

    prepared_bf16 = prepare_classifier_lws(W2, s2, weight_dtype=jnp.bfloat16)
    x2_bf16 = x2.astype(jnp.bfloat16)
    y2 = jax.block_until_ready(classifier_lws_forward(x2_bf16, prepared_bf16))

    # Reference built from the same bf16-quantized operands (f32 accumulation).
    y2_ref = (
        x2_bf16.astype(jnp.float32) @ W2.astype(jnp.bfloat16).astype(jnp.float32).T
    ) * s2[None, :]
    assert y2.shape == (B2, C2)
    assert jnp.allclose(y2.astype(jnp.float32), y2_ref, atol=2e-2, rtol=2e-2)

    print("KERNEL_OK")
</pallas_src>

<mosaic_0001>
module attributes {stable_mosaic.version = 11 : i64} {
  func.func @_lws_kernel_single_k(%arg0: i32, %arg1: i32, %arg2: memref<8x128xf32, #tpu.memory_space<vmem>>, %arg3: memref<128x128xf32, #tpu.memory_space<vmem>>, %arg4: memref<1x128xf32, #tpu.memory_space<vmem>>, %arg5: memref<8x128xf32, #tpu.memory_space<vmem>>) attributes {dimension_semantics = [#tpu.dimension_semantics<parallel>, #tpu.dimension_semantics<parallel>], iteration_bounds = array<i64: 1, 2>, scalar_prefetch = 0 : i64, scratch_operands = 0 : i64, tpu.core_type = #tpu.core_type<tc>, window_params = [{transform_indices = @transform_0, window_bounds = array<i64: 8, 128>}, {transform_indices = @transform_1, window_bounds = array<i64: 128, 128>}, {transform_indices = @transform_2, window_bounds = array<i64: 1, 128>}, {transform_indices = @transform_3, window_bounds = array<i64: 8, 128>}]} {
    %c0 = arith.constant 0 : index
    %c0_0 = arith.constant 0 : index
    %0 = vector.load %arg2[%c0, %c0_0] : memref<8x128xf32, #tpu.memory_space<vmem>>, vector<8x128xf32>
    %c0_1 = arith.constant 0 : index
    %c0_2 = arith.constant 0 : index
    %1 = vector.load %arg3[%c0_1, %c0_2] : memref<128x128xf32, #tpu.memory_space<vmem>>, vector<128x128xf32>
    %cst = arith.constant dense<0.000000e+00> : vector<8x128xf32>
    %2 = tpu.matmul %0, %1, %cst {dimension_numbers = #tpu.dot_dimension_numbers<[1], [0], [0], [1], [0, 0, 1, 1], [], []>} : vector<8x128xf32>, vector<128x128xf32>, vector<8x128xf32> -> vector<8x128xf32>
    %c0_3 = arith.constant 0 : index
    %c0_4 = arith.constant 0 : index
    %3 = vector.load %arg4[%c0_3, %c0_4] : memref<1x128xf32, #tpu.memory_space<vmem>>, vector<1x128xf32>
    %4 = vector.broadcast %3 : vector<1x128xf32> to vector<8x128xf32>
    %5 = arith.mulf %2, %4 : vector<8x128xf32>
    %c0_5 = arith.constant 0 : index
    %c0_6 = arith.constant 0 : index
    %6 = vector.load %arg5[%c0_5, %c0_6] : memref<8x128xf32, #tpu.memory_space<vmem>>, vector<8x128xf32>
    tpu.vector_store %arg5[%c0_5, %c0_6], %5 {strides = array<i32>} : memref<8x128xf32, #tpu.memory_space<vmem>>, vector<8x128xf32>,
    return
  }
  func.func @transform_0(%arg0: i32, %arg1: i32) -> (i32, i32) {
    %c0_i32 = arith.constant 0 : i32
    %c0_i32_0 = arith.constant 0 : i32
    return %arg0, %c0_i32 : i32, i32
  }
  func.func @transform_1(%arg0: i32, %arg1: i32) -> (i32, i32) {
    %c0_i32 = arith.constant 0 : i32
    %c0_i32_0 = arith.constant 0 : i32
    return %c0_i32, %arg1 : i32, i32
  }
  func.func @transform_2(%arg0: i32, %arg1: i32) -> (i32, i32) {
    %c0_i32 = arith.constant 0 : i32
    %c0_i32_0 = arith.constant 0 : i32
    return %c0_i32, %arg1 : i32, i32
  }
  func.func @transform_3(%arg0: i32, %arg1: i32) -> (i32, i32) {
    %c0_i32 = arith.constant 0 : i32
    return %arg0, %arg1 : i32, i32
  }
}

</mosaic_0001>

<bundles_post_ra>
// kernel: classifier_lws_apply.1
= control target key start
LH: loop header
LB: loop body
LE: loop exit
PB: predicated region body
PF: predicated region fallthrough
CT: control target
= control target key end

     0   :  { %s958_s0 = inlined_call_operand.hbm [shape: f32[8,128], index: 0, kind: input, shape index: {}]   ;;  %s959_s1 = inlined_call_operand.hbm [shape: f32[128,256], index: 1, kind: input, shape index: {}]   ;;  %s960_s2 = inlined_call_operand.vmem [shape: f32[1,256], index: 2, kind: input, shape index: {}]   ;;  %s961_s3 = inlined_call_operand.hbm [shape: f32[8,256], index: 3, kind: output, shape index: {}]  }
   0x1   :  { %964 = sst [smem:[#allocation11_spill]] %s958_s0 }
   0x2   :  { %8 = vsyncpa [#allocation3], 0 }
   0x3   :  { %9 = vsyncpa [#allocation6], 0 }
   0x4   :  { %11 = vsyncpa [#allocation6 + $0x1], 0 }
   0x5   :  { %12 = vsyncpa [#allocation4], 0 }
   0x6   :  { %14 = vsyncpa [#allocation4 + $0x1], 0  ;;  %s765_s12 = smov 0   ;;  %s767_s13 = smov 0  }
   0x7   :  { %s769_s14 = smov 0   ;;  %s771_s15 = smov 0  }
   0x8   :  { %s773_s16 = smov 0   ;;  %s775_s17 = smov 0  }
   0x9 LB: > { %s451_s18 = sadd.s32 4294967295, %s735_s17   ;;  %s452_s19 = sadd.s32 4294967294, %s735_s17   ;;  %s735_s17 = sphi %s775_s17, %s20_s17   ;;  %s731_s16 = sphi %s773_s16, %s982_s16   ;;  %s727_s15 = sphi %s771_s15, %s981_s15   ;;  %s723_s14 = sphi %s769_s14, %s980_s14   ;;  %s719_s13 = sphi %s767_s13, %s979_s13   ;;  %s715_s12 = sphi %s765_s12, %s978_s12  }
   0xa   : > { %s65_s20 = sadd.s32 1, %s723_s14  ;;  %p72_p0 = scmp.ne.s32.totalorder %s723_s14, %s719_s13 }
   0xb   : > { %p73_p1 = scmp.eq.s32.totalorder %s735_s17, 0  ;;  %p78_p2 = scmp.ne.s32.totalorder %s719_s13, %s715_s12 }
   0xc   : > { %p803_p3 = scmp.eq.s32.totalorder %s451_s18, 0  ;;  %p130_p4 = scmp.eq.s32.totalorder %s451_s18, 1 }
   0xd   : > { %p807_p5 = por %p73_p1, %p72_p0  ;;  %p136_p6 = scmp.eq.s32.totalorder %s452_s19, 1 }
   0xe   : > { %p813_p7 = por %p803_p3, %p78_p2  ;;  %p817_p8 = por %p130_p4, %p72_p0 }
   0xf   : > { %p821_p9 = por %p136_p6, %p78_p2  ;;  %p453_p10 = scmp.ge.s32.totalorder %s735_s17, 1 }
  0x10   : > { %s967_s23 = scalar_select %p813_p7, 1, 0 }
  0x11   : > { %s968_s24 = scalar_select %p817_p8, 1, 0 }
  0x12   : > { %s969_s25 = scalar_select %p821_p9, 1, 0 }
  0x13   : > { %p143_p11 = scmp.lt.s32.totalorder %s735_s17, 3  ;;  %s737_s27 = smov [#allocation2]  }
  0x14   : > { %s158_s28 = sshll.u32 %s737_s27, 4  ;;  %p540_p1 = scmp.lt.s32.totalorder %s735_s17, 2  ;;  %s159_s28 = int_to_ptr.vmem [resolvable:$true] %s158_s28 }
  0x15   : > { %p828_p13 = pnand %p453_p10, %p143_p11  ;;  %s29_s4 = sadd.s32 1, %s731_s16 }
  0x16   : > { %p837_p4 = pnand %p540_p1, %p807_p5  ;;  %p30_p6 = scmp.ge.s32.totalorder %s29_s4, 2 }
  0x17   : > { %p527_p0 = pneg %p828_p13  ;;  %s169_s5 = sand.u32 1, %s723_s14  }
  0x18   : > { %s608_s6 = scalar_lea.vmem %s159_s28, 128  ;;  %p616_p8 = scmp.lt.s32.totalorder %s159_s28, %s159_s28 }
  0x19   : > { %p843_p2 = pnand %p527_p0, %p803_p3  ;;  %p609_p11 = scmp.ne.s32.totalorder %s159_s28, %s608_s6 }
  0x1a   : > { %p617_p5 = scmp.lt.s32.totalorder %s608_s6, %s608_s6 }
  0x1b   : > { %p599_p10 = pneg %p843_p2 }
  0x1c   : > { %p618_p1 = por %p617_p5, %p616_p8 }
  0x1d   : > { %p611_p12 = pnand %p609_p11, %p599_p10 }
  0x1f   : > { %p612_p9 = pneg %p611_p12 }
  0x21   : > { %p619_p7 = pnand %p618_p1, %p612_p9 }
  0x23   : > { %622 = shalt.err (!%p619_p7)
}
  0x24   : > { %s973_s0 = sld [smem:[#allocation11_spill]]  ;;  %s984_s4 = smov (%p30_p6, %s29_s4), 0 }
  0x25   : > { %s456_s9 = sshll.u32 %s169_s5, 7  ;;  %s62_s10 = ssub.s32 %s731_s16, %s984_s4 }
  0x26   : > { %p63_p12 = scmp.eq.s32.totalorder %s62_s10, 0  ;;  %s457_s11 = sshll.u32 %s731_s16, 7 }
  0x27   : > { %s178_s22 = scalar_lea.hbm %s959_s1, %s457_s11  ;;  %s173_s27 = scalar_lea.vmem [#allocation5], %s456_s9 }
  0x28   : > { %s179_s30 = sshll.u32 %s173_s27, 4  ;;  %s170_s7 = scalar_lea.sflag [#allocation6], %s169_s5  ;;  %s180_s30 = int_to_ptr.vmem [resolvable:$true] %s179_s30 }
  0x29   : > { %s867_s6 = scalar_select %p63_p12, %s723_s14, %s65_s20  }
  0x2a   : > { %530 = dma.hbm_to_vmem [thread:$0]  (!%p843_p2), %s973_s0, 128, %s159_s28, [#allocation3]  }
  0x2b   : > { %p625_p7 = pneg %p837_p4  ;;  %s636_s28 = scalar_lea.vmem %s180_s30, 2048 }
  0x2c   : > { %p637_p8 = scmp.ne.s32.totalorder %s180_s30, %s636_s28  ;;  %s738_s8 = smov [#allocation5]  }
  0x2d   : > { %s641_s10 = sshll.u32 %s738_s8, 4  ;;  %s642_s10 = int_to_ptr.vmem [resolvable:$false] %s641_s10 }
  0x2e   : > { %p639_p9 = pnand %p637_p8, %p625_p7  ;;  %s643_s0 = scalar_lea.vmem %s642_s10, 4096 }
  0x2f   : > { %p644_p2 = scmp.lt.s32.totalorder %s180_s30, %s642_s10  ;;  %p645_p6 = scmp.lt.s32.totalorder %s643_s0, %s636_s28 }
  0x30   : > { %p640_p0 = pneg %p639_p9 }
  0x31   : > { %p646_p10 = por %p645_p6, %p644_p2 }
  0x33   : > { %p647_p11 = pnand %p646_p10, %p640_p0 }
  0x35   : > { %650 = shalt.err (!%p647_p11)
}
  0x36   : > { %s739_s9 = smov 256   ;;  %s740_s20 = smov 128  }
  0x37   : > { %s741_s11 = smov 8   ;;  %197 = sbr.rel (%p828_p13) target bundleno = 306 (0x132), region = 32 }
  0x38   : > { %534 = dma.hbm_to_vmem [thread:$0]  (!%p837_p4), %s178_s22, 2048, %s180_s30, %s170_s7, %s739_s9, %s740_s20, %s741_s11  }
  0x3c   : > { %702 = dma.done.wait (%p803_p3), [#allocation3], 128  }
  0x3d   : > { %704 = vsyncadd (%p803_p3), [#allocation3], 4294967168  ;;  %s880_s0 = sand.u32 1, %s719_s13   ;;  %p974_p4 = scmp.ne.s32.totalorder %s967_s23, 0 }
  0x3e   : > { %s460_s5 = sshll.u32 %s880_s0, 7  ;;  %s204_s18 = scalar_lea.sflag [#allocation6], %s880_s0 }
  0x3f   : > { %s884_s19 = scalar_lea.vmem [#allocation5], %s460_s5 }
  0x40   : > { %706 = dma.done.wait (%p974_p4), %s204_s18, 2048  }
  0x41   : > { %708 = vsyncadd (%p974_p4), %s204_s18, 4294965248  ;;  %v742_v0 = vmov 0.0   ;;  %vm743_vm0 = vmmov 0   ;;  %v252_v1 = vld [vmem:[%s884_s19 + $0x78] sm:$0xff]  ;;  %v251_v2 = vld [vmem:[%s884_s19 + $0x70] sm:$0xff]  ;;  %p233_p3 = scmp.lt.s32.totalorder %s727_s15, 1 }
  0x42   : > { %484 = vmatprep.subr.mxu0 %v742_v0  ;;  %516 = vmatprep.mubr.msk.f32.mxu0 %vm743_vm0, %v742_v0  ;;  %v250_v3 = vld [vmem:[%s884_s19 + $0x68] sm:$0xff]  ;;  %v249_v4 = vld [vmem:[%s884_s19 + $0x60] sm:$0xff]  ;;  %v248_v5 = vld [vmem:[%s884_s19 + $0x58] sm:$0xff]  ;;  %s461_s23 = sshll.u32 %s880_s0, 3  ;;  %s464_s27 = sshll.u32 %s727_s15, 7 }
  0x43   : > { %485 = vmatpush3.msra.mxu0 %v252_v1  ;;  %v247_v6 = vld [vmem:[%s884_s19 + $0x50] sm:$0xff]  ;;  %v246_v7 = vld [vmem:[%s884_s19 + $0x48] sm:$0xff]  ;;  %v245_v8 = vld [vmem:[%s884_s19 + $0x40] sm:$0xff]  ;;  %s234_s21 = scalar_select %p233_p3, %s727_s15, 1 }
  0x44   : > { %486 = vmatprep.subr.mxu0 %v742_v0  ;;  %v244_v9 = vld [vmem:[%s884_s19 + $0x38] sm:$0xff]  ;;  %v243_v10 = vld [vmem:[%s884_s19 + $0x30] sm:$0xff]  ;;  %v242_v11 = vld [vmem:[%s884_s19 + $0x28] sm:$0xff]  ;;  %s232_s30 = scalar_lea.vmem [#allocation7], %s461_s23  ;;  %s916_s10 = scalar_lea.hbm %s961_s3, %s464_s27 }
  0x45   : > { %487 = vmatpush3.msra.mxu0 %v251_v2  ;;  %v241_v12 = vld [vmem:[%s884_s19 + $0x20] sm:$0xff]  ;;  %v240_v13 = vld [vmem:[%s884_s19 + $0x18] sm:$0xff]  ;;  %v239_v14 = vld [vmem:[%s884_s19 + $0x10] sm:$0xff]  ;;  %s235_s22 = scalar_lea.vmem %s960_s2, %s234_s21  ;;  %s348_s7 = sshll.u32 %s232_s30, 4  ;;  %s349_s7 = int_to_ptr.vmem [resolvable:$true] %s348_s7 }
  0x46   : > { %488 = vmatprep.subr.mxu0 %v742_v0  ;;  %v238_v15 = vld [vmem:[%s884_s19 + $0x8] sm:$0xff]  ;;  %v237_v16 = vld [vmem:[%s884_s19] sm:$0xff]  ;;  %v236_v17 = vld [vmem:[#allocation2] sm:$0xff]  ;;  %s333_s9 = scalar_lea.sflag [#allocation4], %s880_s0  ;;  %s651_s20 = scalar_lea.vmem %s349_s7, 128 }
  0x47   : > { %489 = vmatpush3.msra.mxu0 %v250_v3  ;;  %v462_v18 = vld [vmem:[%s235_s22] ss:$0 sm:$0xff]  ;;  %p652_p13 = scmp.ne.s32.totalorder %s349_s7, %s651_s20  ;;  %p975_p5 = scmp.ne.s32.totalorder %s968_s24, 0 }
  0x48   : > { %490 = vmatprep.subr.mxu0 %v742_v0  ;;  %s744_s11 = smov [#allocation7]  }
  0x49   : > { %491 = vmatpush3.msra.mxu0 %v249_v4  ;;  %p653_p1 = pnand %p652_p13, %p975_p5  ;;  %s655_s15 = sshll.u32 %s744_s11, 4  ;;  %s656_s15 = int_to_ptr.vmem [resolvable:$false] %s655_s15 }
  0x4a   : > { %492 = vmatprep.subr.mxu0 %v742_v0  ;;  %s657_s5 = scalar_lea.vmem %s656_s15, 256  ;;  %p658_p7 = scmp.lt.s32.totalorder %s349_s7, %s656_s15 }
  0x4b   : > { %493 = vmatpush3.msra.mxu0 %v248_v5  ;;  %p654_p12 = pneg %p653_p1  ;;  %p659_p8 = scmp.lt.s32.totalorder %s657_s5, %s651_s20 }
  0x4c   : > { %494 = vmatprep.subr.mxu0 %v742_v0 }
  0x4d   : > { %495 = vmatpush3.msra.mxu0 %v247_v6  ;;  %p660_p9 = por %p659_p8, %p658_p7 }
  0x4e   : > { %496 = vmatprep.subr.mxu0 %v742_v0 }
  0x4f   : > { %497 = vmatpush3.msra.mxu0 %v246_v7  ;;  %p661_p0 = pnand %p660_p9, %p654_p12 }
  0x50   : > { %498 = vmatprep.subr.mxu0 %v742_v0 }
  0x51   : > { %499 = vmatpush3.msra.mxu0 %v245_v8 }
  0x52   : > { %500 = vmatprep.subr.mxu0 %v742_v0 }
  0x53   : > { %501 = vmatpush3.msra.mxu0 %v244_v9 }
  0x54   : > { %502 = vmatprep.subr.mxu0 %v742_v0 }
  0x55   : > { %503 = vmatpush3.msra.mxu0 %v243_v10 }
  0x56   : > { %504 = vmatprep.subr.mxu0 %v742_v0 }
  0x57   : > { %505 = vmatpush3.msra.mxu0 %v242_v11 }
  0x58   : > { %506 = vmatprep.subr.mxu0 %v742_v0 }
  0x59   : > { %507 = vmatpush3.msra.mxu0 %v241_v12 }
  0x5a   : > { %508 = vmatprep.subr.mxu0 %v742_v0 }
  0x5b   : > { %509 = vmatpush3.msra.mxu0 %v240_v13 }
  0x5c   : > { %510 = vmatprep.subr.mxu0 %v742_v0 }
  0x5d   : > { %511 = vmatpush3.msra.mxu0 %v239_v14 }
  0x5e   : > { %512 = vmatprep.subr.mxu0 %v742_v0 }
  0x5f   : > { %513 = vmatpush3.msra.mxu0 %v238_v15 }
  0x60   : > { %514 = vmatprep.subr.mxu0 %v742_v0 }
  0x61   : > { %515 = vmatpush3.msra.mxu0 %v237_v16 }
  0x62   : > { %517 = vmatmul.mubr.f32.vlgmr.msra.gmra.mxu0 %v236_v17 }
 0x122   : > { %v319_v19 = vpop.f32.mrf.mxu0 }
 0x123   : > { %v330_v20 = vmul.f32 %v462_v18, %v319_v19 }
 0x124   : > { %v518_v21 = vpop.f32.mrf.mxu0 }
 0x125   : > { %331 = vst [vmem:[%s232_s30] sm:$0xff] %v330_v20 }
 0x126   : > { %664 = shalt.err (!%p661_p0)
}
 0x127   : > { %s665_s18 = scalar_lea.hbm %s916_s10, 128  ;;  %s669_s21 = scalar_lea.hbm %s961_s3, 256 }
 0x128   : > { %p666_p2 = scmp.ne.s32.totalorder %s916_s10, %s665_s18  ;;  %p670_p11 = scmp.lt.s32.totalorder %s916_s10, %s961_s3 }
 0x129   : > { %p671_p4 = scmp.lt.s32.totalorder %s669_s21, %s665_s18 }
 0x12a   : > { %p667_p6 = pnand %p666_p2, %p975_p5 }
 0x12b   : > { %p672_p3 = por %p671_p4, %p670_p11 }
 0x12c   : > { %p668_p10 = pneg %p667_p6 }
 0x12e   : > { %p673_p13 = pnand %p672_p3, %p668_p10 }
 0x130   : > { %676 = shalt.err (!%p673_p13)
}
 0x131   : > { %525 = dma.vmem_to_hbm [thread:$0]  (%p975_p5), %s349_s7, 128, %s916_s10, %s333_s9  }
 0x132 PF: > { %s360_s29 = sand.u32 1, %s715_s12   ;;  %p976_p1 = scmp.ne.s32.totalorder %s969_s25, 0 }
 0x133   : > { %p977_p12 = scmp.ge.s32.totalorder %s735_s17, 2  ;;  %s361_s22 = scalar_lea.sflag [#allocation4], %s360_s29 }
 0x135   : > { %p536_p7 = pnand %p977_p12, %p976_p1 }
 0x137   : > { %p537_p8 = pneg %p536_p7 }
 0x139   : > { %710 = dma.done.wait (%p537_p8), %s361_s22, 128  }
 0x13a   : > { %712 = vsyncadd (%p537_p8), %s361_s22, 4294967168  ;;  %s20_s17 = sadd.s32 1, %s735_s17   ;;  %s978_s12 = smov %s719_s13 }
 0x13b   : > { %p17_p9 = scmp.ge.s32.totalorder %s20_s17, 4   ;;  %s979_s13 = smov %s723_s14 }
 0x13c   : > { %s980_s14 = smov %s867_s6  ;;  %s981_s15 = smov %s731_s16 }
 0x13d   : > { %s982_s16 = smov %s984_s4  ;;  %19 = sbr.rel (!%p17_p9) target bundleno = 9 (0x9), region = 86 }
 0x142   :  { %366 = vsyncpa [#allocation3], 1 }
 0x143   :  { %368 = vsyncpa [#allocation3 + $0x1], 1 }
 0x144   :  { %369 = vsyncpa [#allocation6], 1 }
 0x145   :  { %371 = vsyncpa [#allocation6 + $0x1], 1 }
 0x146   :  { %372 = vsyncpa [#allocation4], 1 }
 0x147   :  { %374 = vsyncpa [#allocation4 + $0x1], 1 }

</bundles_post_ra>
